<compile_context>
chip_gen: v6e
topology: v6e:2x2x1
jax: 0.10.0
libtpu: 0.0.40
codegen_flags: <defaults>
</compile_context>

<pallas_src>
import functools

import jax
import jax.numpy as jnp
from jax import lax
from jax.experimental import pallas as pl
from jax.experimental.pallas import tpu as pltpu


def _round_up(x, m):
    return ((x + m - 1) // m) * m


def _matmul_bias_relu_kernel(p_ref, w_ref, b_ref, o_ref):
    # p_ref: (TM, Kp)   bf16 patch tile
    # w_ref: (Kp, Cp)   bf16 conv weight with BN scale folded in
    # b_ref: (1,  Cp)   f32  folded BN bias
    # o_ref: (TM, Cp)   f32
    acc = jnp.dot(p_ref[...], w_ref[...], preferred_element_type=jnp.float32)
    o_ref[...] = jnp.maximum(acc + b_ref[...], 0.0).astype(o_ref.dtype)


def _im2col_nhwc(x_nhwc, kh, kw, stride, pad):
    """Extract conv patches. Returns (N*Ho*Wo, kh*kw*C), Ho, Wo.

    Flattened patch ordering is (kh, kw, C): spatial major, channel minor.
    """
    xp = jnp.pad(x_nhwc, ((0, 0), (pad, pad), (pad, pad), (0, 0)))
    n, hp, wp, c = xp.shape
    ho = (hp - kh) // stride + 1
    wo = (wp - kw) // stride + 1
    cols = []
    for i in range(kh):
        for j in range(kw):
            cols.append(xp[:, i:i + ho * stride:stride, j:j + wo * stride:stride, :])
    patches = jnp.stack(cols, axis=3)            # (N, Ho, Wo, kh*kw, C)
    return patches.reshape(n * ho * wo, kh * kw * c), ho, wo


def _pick_tm(m, k_pad, cout_pad, vmem_budget_bytes=24 * 1024 * 1024, tm_cap=512):
    """Pick an M tile that keeps double-buffered tiles well under VMEM budget.

    Budget: 2x bf16 patch tile + 2x f32 output tile (double-buffered) plus the
    resident bf16 weight and f32 bias. 24 MiB leaves headroom on every
    generation (v7x scoped default is 32 MiB of its 64 MiB VMEM).
    """
    fixed = k_pad * cout_pad * 2 + cout_pad * 4
    per_row = 2 * (k_pad * 2) + 2 * (cout_pad * 4)
    tm = (vmem_budget_bytes - fixed) // max(per_row, 1)
    tm = max(16, min(tm_cap, tm))
    tm = max(16, (tm // 16) * 16)                # sublane-friendly (bf16 packs 16)
    return int(min(tm, _round_up(m, 16)))


@functools.partial(jax.jit, static_argnames=("stride", "padding", "eps"))
def basic_conv2d(x_nchw, weight, gamma, beta, running_mean, running_var,
                 *, stride=1, padding=1, eps=1e-3):
    """Forward of BasicConv2d (eval-mode BN). x_nchw: (N, Cin, H, W), f32."""
    n, cin, h, w = x_nchw.shape
    cout, cin_w, kh, kw = weight.shape
    assert cin == cin_w

    # ---- glue (fused in this jit): NCHW -> NHWC (bf16), im2col ----
    x_nhwc = jnp.transpose(x_nchw, (0, 2, 3, 1)).astype(jnp.bfloat16)
    patches, ho, wo = _im2col_nhwc(x_nhwc, kh, kw, stride, padding)
    m, k = patches.shape

    # ---- alignment padding: lane-dense Cout, aligned K (zero pad is exact) ----
    cout_pad = _round_up(cout, 128)
    k_pad = _round_up(k, 128) if k >= 512 else _round_up(k, 16)

    # ---- fold BN (eval) into per-channel weight scale + bias ----
    scale = gamma / jnp.sqrt(running_var + eps)            # (Cout,)
    bias = beta - running_mean * scale                     # (Cout,)
    w_mat = jnp.transpose(weight, (2, 3, 1, 0)).reshape(kh * kw * cin, cout)
    w_mat = (w_mat.astype(jnp.float32) * scale[None, :]).astype(jnp.bfloat16)

    w_p = jnp.pad(w_mat, ((0, k_pad - k), (0, cout_pad - cout)))
    b_p = jnp.pad(bias.astype(jnp.float32).reshape(1, cout),
                  ((0, 0), (0, cout_pad - cout)))

    # ---- tile M with a grid; pad rows so the grid covers it exactly ----
    tm = _pick_tm(m, k_pad, cout_pad)
    m_pad = _round_up(m, tm)
    p_p = jnp.pad(patches, ((0, m_pad - m), (0, k_pad - k)))

    grid = (m_pad // tm,)
    cost = pl.CostEstimate(
        flops=2 * m_pad * k_pad * cout_pad,
        transcendentals=0,
        bytes_accessed=(m_pad * k_pad * 2 + k_pad * cout_pad * 2
                        + cout_pad * 4 + m_pad * cout_pad * 4))

    out_flat = pl.pallas_call(
        _matmul_bias_relu_kernel,
        out_shape=jax.ShapeDtypeStruct((m_pad, cout_pad), jnp.float32),
        grid_spec=pltpu.PrefetchScalarGridSpec(
            num_scalar_prefetch=0,
            grid=grid,
            in_specs=[
                pl.BlockSpec((tm, k_pad), lambda i: (i, 0)),        # patch tile
                pl.BlockSpec((k_pad, cout_pad), lambda i: (0, 0)),  # weights (resident)
                pl.BlockSpec((1, cout_pad), lambda i: (0, 0)),      # bias (resident)
            ],
            out_specs=pl.BlockSpec((tm, cout_pad), lambda i: (i, 0)),
        ),
        compiler_params=pltpu.CompilerParams(
            dimension_semantics=("parallel",),
            vmem_limit_bytes=32 * 1024 * 1024),
        cost_estimate=cost,
    )(p_p, w_p, b_p)

    # ---- glue: slice padding off, (N*Ho*Wo, Cout) -> NCHW ----
    out = out_flat[:m, :cout].reshape(n, ho, wo, cout)
    return jnp.transpose(out, (0, 3, 1, 2))


def _reference(x_nchw, weight, gamma, beta, running_mean, running_var,
               *, stride=1, padding=1, eps=1e-3):
    y = lax.conv_general_dilated(
        x_nchw.astype(jnp.float32), weight.astype(jnp.float32),
        window_strides=(stride, stride),
        padding=[(padding, padding), (padding, padding)],
        dimension_numbers=("NCHW", "OIHW", "NCHW"))
    scale = gamma / jnp.sqrt(running_var + eps)
    bias = beta - running_mean * scale
    y = y * scale[None, :, None, None] + bias[None, :, None, None]
    return jnp.maximum(y, 0.0)


if __name__ == "__main__":
    key = jax.random.PRNGKey(0)

    # (N, Cin, H, W, Cout, KH, KW, stride, padding)
    configs = [
        (2, 4, 16, 16, 8, 3, 3, 1, 1),    # required small shape (grid = 1 tile)
        (2, 8, 32, 32, 16, 3, 3, 1, 1),   # exercises multi-tile grid (M=2048, TM=512)
    ]

    for idx, (N, Cin, H, W, Cout, KH, KW, stride, padding) in enumerate(configs):
        k1, k2, k3, k4, k5, k6 = jax.random.split(jax.random.fold_in(key, idx), 6)
        x = jax.random.normal(k1, (N, Cin, H, W), dtype=jnp.float32)
        weight = 0.1 * jax.random.normal(k2, (Cout, Cin, KH, KW), dtype=jnp.float32)
        gamma = 1.0 + 0.1 * jax.random.normal(k3, (Cout,), dtype=jnp.float32)
        beta = 0.1 * jax.random.normal(k4, (Cout,), dtype=jnp.float32)
        running_mean = 0.1 * jax.random.normal(k5, (Cout,), dtype=jnp.float32)
        running_var = jnp.abs(jax.random.normal(k6, (Cout,), dtype=jnp.float32)) + 0.5

        out = basic_conv2d(x, weight, gamma, beta, running_mean, running_var,
                           stride=stride, padding=padding, eps=1e-3)
        out = jax.block_until_ready(out)

        ref = _reference(x, weight, gamma, beta, running_mean, running_var,
                         stride=stride, padding=padding, eps=1e-3)
        ho = (H + 2 * padding - KH) // stride + 1
        wo = (W + 2 * padding - KW) // stride + 1
        assert out.shape == (N, Cout, ho, wo), (out.shape, (N, Cout, ho, wo))
        # bf16 MXU inputs with f32 accumulation -> loosen tolerance vs pure-f32 ref.
        assert jnp.allclose(out, ref, atol=3e-2, rtol=3e-2), (
            f"mismatch vs reference (config {idx}): "
            f"max abs err {float(jnp.max(jnp.abs(out - ref)))}")

    print("KERNEL_OK")
</pallas_src>

<mosaic_0001>
module attributes {stable_mosaic.version = 11 : i64} {
  func.func @_matmul_bias_relu_kernel(%arg0: i32, %arg1: memref<512x48xbf16, #tpu.memory_space<vmem>>, %arg2: memref<48x128xbf16, #tpu.memory_space<vmem>>, %arg3: memref<1x128xf32, #tpu.memory_space<vmem>>, %arg4: memref<512x128xf32, #tpu.memory_space<vmem>>) attributes {dimension_semantics = [#tpu.dimension_semantics<parallel>], iteration_bounds = array<i64: 1>, scalar_prefetch = 0 : i64, scratch_operands = 0 : i64, tpu.core_type = #tpu.core_type<tc>, window_params = [{transform_indices = @transform_0, window_bounds = array<i64: 512, 48>}, {pipeline_mode = #tpu.pipeline_mode<synchronous>, transform_indices = @transform_1, window_bounds = array<i64: 48, 128>}, {pipeline_mode = #tpu.pipeline_mode<synchronous>, transform_indices = @transform_2, window_bounds = array<i64: 1, 128>}, {transform_indices = @transform_3, window_bounds = array<i64: 512, 128>}]} {
    %c0 = arith.constant 0 : index
    %c0_0 = arith.constant 0 : index
    %0 = vector.load %arg1[%c0, %c0_0] : memref<512x48xbf16, #tpu.memory_space<vmem>>, vector<512x48xbf16>
    %c0_1 = arith.constant 0 : index
    %c0_2 = arith.constant 0 : index
    %1 = vector.load %arg2[%c0_1, %c0_2] : memref<48x128xbf16, #tpu.memory_space<vmem>>, vector<48x128xbf16>
    %cst = arith.constant dense<0.000000e+00> : vector<512x128xf32>
    %2 = tpu.matmul %0, %1, %cst {dimension_numbers = #tpu.dot_dimension_numbers<[1], [0], [0], [1], [0, 0, 1, 1], [], []>} : vector<512x48xbf16>, vector<48x128xbf16>, vector<512x128xf32> -> vector<512x128xf32>
    %c0_3 = arith.constant 0 : index
    %c0_4 = arith.constant 0 : index
    %3 = vector.load %arg3[%c0_3, %c0_4] : memref<1x128xf32, #tpu.memory_space<vmem>>, vector<1x128xf32>
    %4 = vector.broadcast %3 : vector<1x128xf32> to vector<512x128xf32>
    %5 = arith.addf %2, %4 : vector<512x128xf32>
    %cst_5 = arith.constant 0.000000e+00 : f32
    %6 = vector.broadcast %cst_5 : f32 to vector<512x128xf32>
    %7 = arith.maximumf %5, %6 : vector<512x128xf32>
    %c0_6 = arith.constant 0 : index
    %c0_7 = arith.constant 0 : index
    %8 = vector.load %arg4[%c0_6, %c0_7] : memref<512x128xf32, #tpu.memory_space<vmem>>, vector<512x128xf32>
    tpu.vector_store %arg4[%c0_6, %c0_7], %7 {strides = array<i32>} : memref<512x128xf32, #tpu.memory_space<vmem>>, vector<512x128xf32>,
    return
  }
  func.func @transform_0(%arg0: i32) -> (i32, i32) {
    %c0_i32 = arith.constant 0 : i32
    %c0_i32_0 = arith.constant 0 : i32
    return %arg0, %c0_i32 : i32, i32
  }
  func.func @transform_1(%arg0: i32) -> (i32, i32) {
    %c0_i32 = arith.constant 0 : i32
    %c0_i32_0 = arith.constant 0 : i32
    %c0_i32_1 = arith.constant 0 : i32
    return %c0_i32, %c0_i32_0 : i32, i32
  }
  func.func @transform_2(%arg0: i32) -> (i32, i32) {
    %c0_i32 = arith.constant 0 : i32
    %c0_i32_0 = arith.constant 0 : i32
    %c0_i32_1 = arith.constant 0 : i32
    return %c0_i32, %c0_i32_0 : i32, i32
  }
  func.func @transform_3(%arg0: i32) -> (i32, i32) {
    %c0_i32 = arith.constant 0 : i32
    %c0_i32_0 = arith.constant 0 : i32
    return %arg0, %c0_i32 : i32, i32
  }
}

</mosaic_0001>

<bundles_post_ra>
// kernel: basic_conv2d.1
= control target key start
LH: loop header
LB: loop body
LE: loop exit
PB: predicated region body
PF: predicated region fallthrough
CT: control target
= control target key end

     0   :  { %vm270_vm0 = vcmask 392192   ;;  %s1420_s1 = inlined_call_operand.vmem [shape: bf16[48,128], index: 1, kind: input, shape index: {}]   ;;  %s1421_s0 = inlined_call_operand.vmem [shape: bf16[512,48], index: 0, kind: input, shape index: {}]   ;;  %s1422_s2 = inlined_call_operand.vmem [shape: f32[1,128], index: 2, kind: input, shape index: {}]   ;;  %s1423_s3 = inlined_call_operand.vmem [shape: f32[512,128], index: 3, kind: output, shape index: {}]  }
   0x1   :  { %v967_v0 = vld [vmem:[%s1420_s1 + $0x10] sm:$0xff]   ;;  %v968_v1 = vld [vmem:[%s1420_s1 + $0x8] sm:$0xff]   ;;  %v969_v2 = vld [vmem:[%s1420_s1] sm:$0xff]  }
   0x2   :  { %891 = vmatprep.subr.bf16.mxu0 %v967_v0  ;;  %961 = vmatprep.subr.bf16.mxu1 %v967_v0  ;;  %v970_v3 = vld [vmem:[%s1421_s0] sm:$0xff]   ;;  %v972_v5 = vld [vmem:[%s1421_s0 + $0x8] sm:$0xff]   ;;  %v974_v7 = vld [vmem:[%s1421_s0 + $0x10] sm:$0xff]  }
   0x3   :  { %892 = vmatpush3.bf16.msra.mxu0 %v967_v0  ;;  %964 = vmatpush3.bf16.msra.mxu1 %v967_v0  ;;  %v971_v4 = vld [vmem:[%s1421_s0 + $0x80] sm:$0xff]   ;;  %v973_v6 = vld [vmem:[%s1421_s0 + $0x88] sm:$0xff]   ;;  %v975_v8 = vld [vmem:[%s1421_s0 + $0x90] sm:$0xff]  }
   0x4   :  { %893 = vmatprep.subr.bf16.mxu0 %v968_v1  ;;  %962 = vmatprep.subr.bf16.mxu1 %v968_v1  ;;  %v976_v9 = vld [vmem:[%s1421_s0 + $0x18] sm:$0xff]   ;;  %v978_v11 = vld [vmem:[%s1421_s0 + $0x20] sm:$0xff]   ;;  %v980_v13 = vld [vmem:[%s1421_s0 + $0x28] sm:$0xff]  }
   0x5   :  { %897 = vmatprep.mubr.msk.bf16.mxu0 %vm270_vm0, %v970_v3  ;;  %929 = vmatprep.mubr.msk.bf16.mxu1 %vm270_vm0, %v971_v4  ;;  %v977_v10 = vld [vmem:[%s1421_s0 + $0x98] sm:$0xff]   ;;  %v979_v12 = vld [vmem:[%s1421_s0 + $0xa0] sm:$0xff]   ;;  %v981_v14 = vld [vmem:[%s1421_s0 + $0xa8] sm:$0xff]  }
   0x6   :  { %v982_v15 = vld [vmem:[%s1421_s0 + $0x30] sm:$0xff]   ;;  %v984_v17 = vld [vmem:[%s1421_s0 + $0x38] sm:$0xff]   ;;  %v986_v19 = vld [vmem:[%s1421_s0 + $0x40] sm:$0xff]  }
   0x7   :  { %894 = vmatpush3.bf16.msra.mxu0 %v968_v1  ;;  %965 = vmatpush3.bf16.msra.mxu1 %v968_v1  ;;  %v983_v16 = vld [vmem:[%s1421_s0 + $0xb0] sm:$0xff]   ;;  %v985_v18 = vld [vmem:[%s1421_s0 + $0xb8] sm:$0xff]   ;;  %v987_v20 = vld [vmem:[%s1421_s0 + $0xc0] sm:$0xff]  }
   0x8   :  { %895 = vmatprep.subr.bf16.mxu0 %v969_v2  ;;  %963 = vmatprep.subr.bf16.mxu1 %v969_v2  ;;  %v988_v21 = vld [vmem:[%s1421_s0 + $0x48] sm:$0xff]   ;;  %v990_v23 = vld [vmem:[%s1421_s0 + $0x50] sm:$0xff]   ;;  %v992_v25 = vld [vmem:[%s1421_s0 + $0x58] sm:$0xff]  }
   0x9   :  { %v989_v22 = vld [vmem:[%s1421_s0 + $0xc8] sm:$0xff]   ;;  %v991_v24 = vld [vmem:[%s1421_s0 + $0xd0] sm:$0xff]   ;;  %v993_v26 = vld [vmem:[%s1421_s0 + $0xd8] sm:$0xff]  }
   0xa   :  { %v994_v27 = vld [vmem:[%s1421_s0 + $0x60] sm:$0xff]   ;;  %v996_v29 = vld [vmem:[%s1421_s0 + $0x68] sm:$0xff]   ;;  %v998_v31 = vld [vmem:[%s1421_s0 + $0x70] sm:$0xff]  }
   0xb   :  { %896 = vmatpush3.bf16.msra.mxu0 %v969_v2  ;;  %966 = vmatpush3.bf16.msra.mxu1 %v969_v2  ;;  %v995_v28 = vld [vmem:[%s1421_s0 + $0xe0] sm:$0xff]   ;;  %v997_v30 = vld [vmem:[%s1421_s0 + $0xe8] sm:$0xff]   ;;  %v999_v32 = vld [vmem:[%s1421_s0 + $0xf0] sm:$0xff]  }
   0xc   :  { %v1000_v33 = vld [vmem:[%s1421_s0 + $0x78] sm:$0xff]   ;;  %v1162_v35 = vld [vmem:[%s1422_s2] ss:$0 sm:$0xff] }
   0xd   :  { %v1001_v34 = vld [vmem:[%s1421_s0 + $0xf8] sm:$0xff]  }
   0xe   :  { %898 = vmatmul.mubr.msk.bf16.vlgmr.msra.gmra.mxu0 %vm270_vm0, %v972_v5  ;;  %930 = vmatmul.mubr.msk.bf16.vlgmr.msra.gmra.mxu1 %vm270_vm0, %v973_v6 }
   0xf   :  { %901 = vmatprep.mubr.msk.bf16.mxu0 %vm270_vm0, %v974_v7  ;;  %933 = vmatprep.mubr.msk.bf16.mxu1 %vm270_vm0, %v975_v8 }
  0x16   :  { %902 = vmatmul.mubr.msk.bf16.gmra.mxu0 %vm270_vm0, %v976_v9  ;;  %934 = vmatmul.mubr.msk.bf16.gmra.mxu1 %vm270_vm0, %v977_v10 }
  0x17   :  { %905 = vmatprep.mubr.msk.bf16.mxu0 %vm270_vm0, %v978_v11  ;;  %937 = vmatprep.mubr.msk.bf16.mxu1 %vm270_vm0, %v979_v12 }
  0x1e   :  { %906 = vmatmul.mubr.msk.bf16.gmra.mxu0 %vm270_vm0, %v980_v13  ;;  %938 = vmatmul.mubr.msk.bf16.gmra.mxu1 %vm270_vm0, %v981_v14 }
  0x1f   :  { %909 = vmatprep.mubr.msk.bf16.mxu0 %vm270_vm0, %v982_v15  ;;  %941 = vmatprep.mubr.msk.bf16.mxu1 %vm270_vm0, %v983_v16 }
  0x26   :  { %910 = vmatmul.mubr.msk.bf16.gmra.mxu0 %vm270_vm0, %v984_v17  ;;  %942 = vmatmul.mubr.msk.bf16.gmra.mxu1 %vm270_vm0, %v985_v18 }
  0x27   :  { %913 = vmatprep.mubr.msk.bf16.mxu0 %vm270_vm0, %v986_v19  ;;  %945 = vmatprep.mubr.msk.bf16.mxu1 %vm270_vm0, %v987_v20 }
  0x2e   :  { %914 = vmatmul.mubr.msk.bf16.gmra.mxu0 %vm270_vm0, %v988_v21  ;;  %946 = vmatmul.mubr.msk.bf16.gmra.mxu1 %vm270_vm0, %v989_v22 }
  0x2f   :  { %917 = vmatprep.mubr.msk.bf16.mxu0 %vm270_vm0, %v990_v23  ;;  %949 = vmatprep.mubr.msk.bf16.mxu1 %vm270_vm0, %v991_v24 }
  0x36   :  { %918 = vmatmul.mubr.msk.bf16.gmra.mxu0 %vm270_vm0, %v992_v25  ;;  %950 = vmatmul.mubr.msk.bf16.gmra.mxu1 %vm270_vm0, %v993_v26 }
  0x37   :  { %921 = vmatprep.mubr.msk.bf16.mxu0 %vm270_vm0, %v994_v27  ;;  %953 = vmatprep.mubr.msk.bf16.mxu1 %vm270_vm0, %v995_v28 }
  0x3e   :  { %922 = vmatmul.mubr.msk.bf16.gmra.mxu0 %vm270_vm0, %v996_v29  ;;  %954 = vmatmul.mubr.msk.bf16.gmra.mxu1 %vm270_vm0, %v997_v30 }
  0x3f   :  { %925 = vmatprep.mubr.msk.bf16.mxu0 %vm270_vm0, %v998_v31  ;;  %957 = vmatprep.mubr.msk.bf16.mxu1 %vm270_vm0, %v999_v32 }
  0x46   :  { %926 = vmatmul.mubr.msk.bf16.gmra.mxu0 %vm270_vm0, %v1000_v33  ;;  %958 = vmatmul.mubr.msk.bf16.gmra.mxu1 %vm270_vm0, %v1001_v34 }
  0xce   :  { %v899_v36 = vpop.f32.mrf.mxu0  ;;  %v931_v37 = vpop.f32.mrf.mxu1 }
  0xcf   :  { %v410_v38 = vadd.f32 %v899_v36, %v1162_v35  ;;  %v538_v39 = vadd.f32 %v931_v37, %v1162_v35 }
  0xd0   :  { %v401_v40 = vpop.f32.mrf.mxu0  ;;  %v529_v41 = vpop.f32.mrf.mxu1 }
  0xd1   :  { %v658_v42 = vmax.f32 %v410_v38, 0.0  ;;  %v690_v43 = vmax.f32 %v538_v39, 0.0  ;;  %v402_v44 = vadd.f32 %v1162_v35, %v401_v40  ;;  %v530_v45 = vadd.f32 %v1162_v35, %v529_v41 }
  0xd2   :  { %v900_v46 = vpop.f32.mrf.mxu0  ;;  %v932_v47 = vpop.f32.mrf.mxu1 }
  0xd3   :  { %722 = vst [vmem:[%s1423_s3 + $0x10] sm:$0xff] %v658_v42  ;;  %754 = vst [vmem:[%s1423_s3 + $0x110] sm:$0xff] %v690_v43  ;;  %v656_v48 = vmax.f32 %v402_v44, 0.0  ;;  %v688_v49 = vmax.f32 %v530_v45, 0.0  ;;  %v413_v50 = vadd.f32 %v900_v46, %v1162_v35  ;;  %v541_v51 = vadd.f32 %v932_v47, %v1162_v35 }
  0xd4   :  { %v404_v52 = vpop.f32.mrf.mxu0  ;;  %v532_v53 = vpop.f32.mrf.mxu1 }
  0xd5   :  { %720 = vst [vmem:[%s1423_s3] sm:$0xff] %v656_v48  ;;  %752 = vst [vmem:[%s1423_s3 + $0x100] sm:$0xff] %v688_v49  ;;  %v659_v54 = vmax.f32 %v413_v50, 0.0  ;;  %v691_v55 = vmax.f32 %v541_v51, 0.0  ;;  %v405_v56 = vadd.f32 %v1162_v35, %v404_v52  ;;  %v533_v57 = vadd.f32 %v1162_v35, %v532_v53 }
  0xd6   :  { %v903_v58 = vpop.f32.mrf.mxu0  ;;  %v935_v59 = vpop.f32.mrf.mxu1 }
  0xd7   :  { %723 = vst [vmem:[%s1423_s3 + $0x18] sm:$0xff] %v659_v54  ;;  %755 = vst [vmem:[%s1423_s3 + $0x118] sm:$0xff] %v691_v55  ;;  %v657_v60 = vmax.f32 %v405_v56, 0.0  ;;  %v689_v61 = vmax.f32 %v533_v57, 0.0  ;;  %v426_v62 = vadd.f32 %v903_v58, %v1162_v35  ;;  %v554_v63 = vadd.f32 %v935_v59, %v1162_v35 }
  0xd8   :  { %v417_v0 = vpop.f32.mrf.mxu0  ;;  %v545_v1 = vpop.f32.mrf.mxu1 }
  0xd9   :  { %721 = vst [vmem:[%s1423_s3 + $0x8] sm:$0xff] %v657_v60  ;;  %753 = vst [vmem:[%s1423_s3 + $0x108] sm:$0xff] %v689_v61  ;;  %v662_v2 = vmax.f32 %v426_v62, 0.0  ;;  %v694_v3 = vmax.f32 %v554_v63, 0.0  ;;  %v418_v4 = vadd.f32 %v1162_v35, %v417_v0  ;;  %v546_v5 = vadd.f32 %v1162_v35, %v545_v1 }
  0xda   :  { %v904_v6 = vpop.f32.mrf.mxu0  ;;  %v936_v7 = vpop.f32.mrf.mxu1 }
  0xdb   :  { %726 = vst [vmem:[%s1423_s3 + $0x30] sm:$0xff] %v662_v2  ;;  %758 = vst [vmem:[%s1423_s3 + $0x130] sm:$0xff] %v694_v3  ;;  %v660_v8 = vmax.f32 %v418_v4, 0.0  ;;  %v692_v9 = vmax.f32 %v546_v5, 0.0  ;;  %v429_v10 = vadd.f32 %v904_v6, %v1162_v35  ;;  %v557_v11 = vadd.f32 %v936_v7, %v1162_v35 }
  0xdc   :  { %v420_v12 = vpop.f32.mrf.mxu0  ;;  %v548_v13 = vpop.f32.mrf.mxu1 }
  0xdd   :  { %724 = vst [vmem:[%s1423_s3 + $0x20] sm:$0xff] %v660_v8  ;;  %756 = vst [vmem:[%s1423_s3 + $0x120] sm:$0xff] %v692_v9  ;;  %v663_v14 = vmax.f32 %v429_v10, 0.0  ;;  %v695_v15 = vmax.f32 %v557_v11, 0.0  ;;  %v421_v16 = vadd.f32 %v1162_v35, %v420_v12  ;;  %v549_v17 = vadd.f32 %v1162_v35, %v548_v13 }
  0xde   :  { %v907_v18 = vpop.f32.mrf.mxu0  ;;  %v939_v19 = vpop.f32.mrf.mxu1 }
  0xdf   :  { %727 = vst [vmem:[%s1423_s3 + $0x38] sm:$0xff] %v663_v14  ;;  %759 = vst [vmem:[%s1423_s3 + $0x138] sm:$0xff] %v695_v15  ;;  %v661_v20 = vmax.f32 %v421_v16, 0.0  ;;  %v693_v21 = vmax.f32 %v549_v17, 0.0  ;;  %v442_v22 = vadd.f32 %v907_v18, %v1162_v35  ;;  %v570_v23 = vadd.f32 %v939_v19, %v1162_v35 }
  0xe0   :  { %v433_v24 = vpop.f32.mrf.mxu0  ;;  %v561_v25 = vpop.f32.mrf.mxu1 }
  0xe1   :  { %725 = vst [vmem:[%s1423_s3 + $0x28] sm:$0xff] %v661_v20  ;;  %757 = vst [vmem:[%s1423_s3 + $0x128] sm:$0xff] %v693_v21  ;;  %v666_v26 = vmax.f32 %v442_v22, 0.0  ;;  %v698_v27 = vmax.f32 %v570_v23, 0.0  ;;  %v434_v28 = vadd.f32 %v1162_v35, %v433_v24  ;;  %v562_v29 = vadd.f32 %v1162_v35, %v561_v25 }
  0xe2   :  { %v908_v30 = vpop.f32.mrf.mxu0  ;;  %v940_v31 = vpop.f32.mrf.mxu1 }
  0xe3   :  { %730 = vst [vmem:[%s1423_s3 + $0x50] sm:$0xff] %v666_v26  ;;  %762 = vst [vmem:[%s1423_s3 + $0x150] sm:$0xff] %v698_v27  ;;  %v664_v32 = vmax.f32 %v434_v28, 0.0  ;;  %v696_v33 = vmax.f32 %v562_v29, 0.0  ;;  %v445_v34 = vadd.f32 %v908_v30, %v1162_v35  ;;  %v573_v36 = vadd.f32 %v940_v31, %v1162_v35 }
  0xe4   :  { %v436_v37 = vpop.f32.mrf.mxu0  ;;  %v564_v38 = vpop.f32.mrf.mxu1 }
  0xe5   :  { %728 = vst [vmem:[%s1423_s3 + $0x40] sm:$0xff] %v664_v32  ;;  %760 = vst [vmem:[%s1423_s3 + $0x140] sm:$0xff] %v696_v33  ;;  %v667_v39 = vmax.f32 %v445_v34, 0.0  ;;  %v699_v40 = vmax.f32 %v573_v36, 0.0  ;;  %v437_v41 = vadd.f32 %v1162_v35, %v436_v37  ;;  %v565_v42 = vadd.f32 %v1162_v35, %v564_v38 }
  0xe6   :  { %v911_v43 = vpop.f32.mrf.mxu0  ;;  %v943_v44 = vpop.f32.mrf.mxu1 }
  0xe7   :  { %731 = vst [vmem:[%s1423_s3 + $0x58] sm:$0xff] %v667_v39  ;;  %763 = vst [vmem:[%s1423_s3 + $0x158] sm:$0xff] %v699_v40  ;;  %v665_v45 = vmax.f32 %v437_v41, 0.0  ;;  %v697_v46 = vmax.f32 %v565_v42, 0.0  ;;  %v458_v47 = vadd.f32 %v911_v43, %v1162_v35  ;;  %v586_v48 = vadd.f32 %v943_v44, %v1162_v35 }
  0xe8   :  { %v449_v49 = vpop.f32.mrf.mxu0  ;;  %v577_v50 = vpop.f32.mrf.mxu1 }
  0xe9   :  { %729 = vst [vmem:[%s1423_s3 + $0x48] sm:$0xff] %v665_v45  ;;  %761 = vst [vmem:[%s1423_s3 + $0x148] sm:$0xff] %v697_v46  ;;  %v670_v51 = vmax.f32 %v458_v47, 0.0  ;;  %v702_v52 = vmax.f32 %v586_v48, 0.0  ;;  %v450_v53 = vadd.f32 %v1162_v35, %v449_v49  ;;  %v578_v54 = vadd.f32 %v1162_v35, %v577_v50 }
  0xea   :  { %v912_v55 = vpop.f32.mrf.mxu0  ;;  %v944_v56 = vpop.f32.mrf.mxu1 }
  0xeb   :  { %734 = vst [vmem:[%s1423_s3 + $0x70] sm:$0xff] %v670_v51  ;;  %766 = vst [vmem:[%s1423_s3 + $0x170] sm:$0xff] %v702_v52  ;;  %v668_v57 = vmax.f32 %v450_v53, 0.0  ;;  %v700_v58 = vmax.f32 %v578_v54, 0.0  ;;  %v461_v59 = vadd.f32 %v912_v55, %v1162_v35  ;;  %v589_v60 = vadd.f32 %v944_v56, %v1162_v35 }
  0xec   :  { %v452_v61 = vpop.f32.mrf.mxu0  ;;  %v580_v62 = vpop.f32.mrf.mxu1 }
  0xed   :  { %732 = vst [vmem:[%s1423_s3 + $0x60] sm:$0xff] %v668_v57  ;;  %764 = vst [vmem:[%s1423_s3 + $0x160] sm:$0xff] %v700_v58  ;;  %v671_v63 = vmax.f32 %v461_v59, 0.0  ;;  %v703_v0 = vmax.f32 %v589_v60, 0.0  ;;  %v453_v1 = vadd.f32 %v1162_v35, %v452_v61  ;;  %v581_v2 = vadd.f32 %v1162_v35, %v580_v62 }
  0xee   :  { %v915_v3 = vpop.f32.mrf.mxu0  ;;  %v947_v4 = vpop.f32.mrf.mxu1 }
  0xef   :  { %735 = vst [vmem:[%s1423_s3 + $0x78] sm:$0xff] %v671_v63  ;;  %767 = vst [vmem:[%s1423_s3 + $0x178] sm:$0xff] %v703_v0  ;;  %v669_v5 = vmax.f32 %v453_v1, 0.0  ;;  %v701_v6 = vmax.f32 %v581_v2, 0.0  ;;  %v474_v7 = vadd.f32 %v915_v3, %v1162_v35  ;;  %v602_v8 = vadd.f32 %v947_v4, %v1162_v35 }
  0xf0   :  { %v465_v9 = vpop.f32.mrf.mxu0  ;;  %v593_v10 = vpop.f32.mrf.mxu1 }
  0xf1   :  { %733 = vst [vmem:[%s1423_s3 + $0x68] sm:$0xff] %v669_v5  ;;  %765 = vst [vmem:[%s1423_s3 + $0x168] sm:$0xff] %v701_v6  ;;  %v674_v11 = vmax.f32 %v474_v7, 0.0  ;;  %v706_v12 = vmax.f32 %v602_v8, 0.0  ;;  %v466_v13 = vadd.f32 %v1162_v35, %v465_v9  ;;  %v594_v14 = vadd.f32 %v1162_v35, %v593_v10 }
  0xf2   :  { %v916_v15 = vpop.f32.mrf.mxu0  ;;  %v948_v16 = vpop.f32.mrf.mxu1 }
  0xf3   :  { %738 = vst [vmem:[%s1423_s3 + $0x90] sm:$0xff] %v674_v11  ;;  %770 = vst [vmem:[%s1423_s3 + $0x190] sm:$0xff] %v706_v12  ;;  %v672_v17 = vmax.f32 %v466_v13, 0.0  ;;  %v704_v18 = vmax.f32 %v594_v14, 0.0  ;;  %v477_v19 = vadd.f32 %v916_v15, %v1162_v35  ;;  %v605_v20 = vadd.f32 %v948_v16, %v1162_v35 }
  0xf4   :  { %v468_v21 = vpop.f32.mrf.mxu0  ;;  %v596_v22 = vpop.f32.mrf.mxu1 }
  0xf5   :  { %736 = vst [vmem:[%s1423_s3 + $0x80] sm:$0xff] %v672_v17  ;;  %768 = vst [vmem:[%s1423_s3 + $0x180] sm:$0xff] %v704_v18  ;;  %v675_v23 = vmax.f32 %v477_v19, 0.0  ;;  %v707_v24 = vmax.f32 %v605_v20, 0.0  ;;  %v469_v25 = vadd.f32 %v1162_v35, %v468_v21  ;;  %v597_v26 = vadd.f32 %v1162_v35, %v596_v22 }
  0xf6   :  { %v919_v27 = vpop.f32.mrf.mxu0  ;;  %v951_v28 = vpop.f32.mrf.mxu1 }
  0xf7   :  { %739 = vst [vmem:[%s1423_s3 + $0x98] sm:$0xff] %v675_v23  ;;  %771 = vst [vmem:[%s1423_s3 + $0x198] sm:$0xff] %v707_v24  ;;  %v673_v29 = vmax.f32 %v469_v25, 0.0  ;;  %v705_v30 = vmax.f32 %v597_v26, 0.0  ;;  %v490_v31 = vadd.f32 %v919_v27, %v1162_v35  ;;  %v618_v32 = vadd.f32 %v951_v28, %v1162_v35 }
  0xf8   :  { %v481_v33 = vpop.f32.mrf.mxu0  ;;  %v609_v34 = vpop.f32.mrf.mxu1 }
  0xf9   :  { %737 = vst [vmem:[%s1423_s3 + $0x88] sm:$0xff] %v673_v29  ;;  %769 = vst [vmem:[%s1423_s3 + $0x188] sm:$0xff] %v705_v30  ;;  %v678_v36 = vmax.f32 %v490_v31, 0.0  ;;  %v710_v37 = vmax.f32 %v618_v32, 0.0  ;;  %v482_v38 = vadd.f32 %v1162_v35, %v481_v33  ;;  %v610_v39 = vadd.f32 %v1162_v35, %v609_v34 }
  0xfa   :  { %v920_v40 = vpop.f32.mrf.mxu0  ;;  %v952_v41 = vpop.f32.mrf.mxu1 }
  0xfb   :  { %742 = vst [vmem:[%s1423_s3 + $0xb0] sm:$0xff] %v678_v36  ;;  %774 = vst [vmem:[%s1423_s3 + $0x1b0] sm:$0xff] %v710_v37  ;;  %v676_v42 = vmax.f32 %v482_v38, 0.0  ;;  %v708_v43 = vmax.f32 %v610_v39, 0.0  ;;  %v493_v44 = vadd.f32 %v920_v40, %v1162_v35  ;;  %v621_v45 = vadd.f32 %v952_v41, %v1162_v35 }
  0xfc   :  { %v484_v46 = vpop.f32.mrf.mxu0  ;;  %v612_v47 = vpop.f32.mrf.mxu1 }
  0xfd   :  { %740 = vst [vmem:[%s1423_s3 + $0xa0] sm:$0xff] %v676_v42  ;;  %772 = vst [vmem:[%s1423_s3 + $0x1a0] sm:$0xff] %v708_v43  ;;  %v679_v48 = vmax.f32 %v493_v44, 0.0  ;;  %v711_v49 = vmax.f32 %v621_v45, 0.0  ;;  %v485_v50 = vadd.f32 %v1162_v35, %v484_v46  ;;  %v613_v51 = vadd.f32 %v1162_v35, %v612_v47 }
  0xfe   :  { %v923_v52 = vpop.f32.mrf.mxu0  ;;  %v955_v53 = vpop.f32.mrf.mxu1 }
  0xff   :  { %743 = vst [vmem:[%s1423_s3 + $0xb8] sm:$0xff] %v679_v48  ;;  %775 = vst [vmem:[%s1423_s3 + $0x1b8] sm:$0xff] %v711_v49  ;;  %v677_v54 = vmax.f32 %v485_v50, 0.0  ;;  %v709_v55 = vmax.f32 %v613_v51, 0.0  ;;  %v506_v56 = vadd.f32 %v923_v52, %v1162_v35  ;;  %v634_v57 = vadd.f32 %v955_v53, %v1162_v35 }
 0x100   :  { %v497_v58 = vpop.f32.mrf.mxu0  ;;  %v625_v59 = vpop.f32.mrf.mxu1 }
 0x101   :  { %741 = vst [vmem:[%s1423_s3 + $0xa8] sm:$0xff] %v677_v54  ;;  %773 = vst [vmem:[%s1423_s3 + $0x1a8] sm:$0xff] %v709_v55  ;;  %v682_v60 = vmax.f32 %v506_v56, 0.0  ;;  %v714_v61 = vmax.f32 %v634_v57, 0.0  ;;  %v498_v62 = vadd.f32 %v1162_v35, %v497_v58  ;;  %v626_v63 = vadd.f32 %v1162_v35, %v625_v59 }
 0x102   :  { %v924_v0 = vpop.f32.mrf.mxu0  ;;  %v956_v1 = vpop.f32.mrf.mxu1 }
 0x103   :  { %746 = vst [vmem:[%s1423_s3 + $0xd0] sm:$0xff] %v682_v60  ;;  %778 = vst [vmem:[%s1423_s3 + $0x1d0] sm:$0xff] %v714_v61  ;;  %v680_v2 = vmax.f32 %v498_v62, 0.0  ;;  %v712_v3 = vmax.f32 %v626_v63, 0.0  ;;  %v509_v4 = vadd.f32 %v924_v0, %v1162_v35  ;;  %v637_v5 = vadd.f32 %v956_v1, %v1162_v35 }
 0x104   :  { %v500_v6 = vpop.f32.mrf.mxu0  ;;  %v628_v7 = vpop.f32.mrf.mxu1 }
 0x105   :  { %744 = vst [vmem:[%s1423_s3 + $0xc0] sm:$0xff] %v680_v2  ;;  %776 = vst [vmem:[%s1423_s3 + $0x1c0] sm:$0xff] %v712_v3  ;;  %v683_v8 = vmax.f32 %v509_v4, 0.0  ;;  %v715_v9 = vmax.f32 %v637_v5, 0.0  ;;  %v501_v10 = vadd.f32 %v1162_v35, %v500_v6  ;;  %v629_v11 = vadd.f32 %v1162_v35, %v628_v7 }
 0x106   :  { %v927_v12 = vpop.f32.mrf.mxu0  ;;  %v959_v13 = vpop.f32.mrf.mxu1 }
 0x107   :  { %747 = vst [vmem:[%s1423_s3 + $0xd8] sm:$0xff] %v683_v8  ;;  %779 = vst [vmem:[%s1423_s3 + $0x1d8] sm:$0xff] %v715_v9  ;;  %v681_v14 = vmax.f32 %v501_v10, 0.0  ;;  %v713_v15 = vmax.f32 %v629_v11, 0.0  ;;  %v522_v16 = vadd.f32 %v927_v12, %v1162_v35  ;;  %v650_v17 = vadd.f32 %v959_v13, %v1162_v35 }
 0x108   :  { %v513_v18 = vpop.f32.mrf.mxu0  ;;  %v641_v19 = vpop.f32.mrf.mxu1 }
 0x109   :  { %745 = vst [vmem:[%s1423_s3 + $0xc8] sm:$0xff] %v681_v14  ;;  %777 = vst [vmem:[%s1423_s3 + $0x1c8] sm:$0xff] %v713_v15  ;;  %v686_v20 = vmax.f32 %v522_v16, 0.0  ;;  %v718_v21 = vmax.f32 %v650_v17, 0.0  ;;  %v514_v22 = vadd.f32 %v1162_v35, %v513_v18  ;;  %v642_v23 = vadd.f32 %v1162_v35, %v641_v19 }
 0x10a   :  { %v928_v24 = vpop.f32.mrf.mxu0  ;;  %v960_v25 = vpop.f32.mrf.mxu1 }
 0x10b   :  { %750 = vst [vmem:[%s1423_s3 + $0xf0] sm:$0xff] %v686_v20  ;;  %782 = vst [vmem:[%s1423_s3 + $0x1f0] sm:$0xff] %v718_v21  ;;  %v684_v26 = vmax.f32 %v514_v22, 0.0  ;;  %v716_v27 = vmax.f32 %v642_v23, 0.0  ;;  %v525_v28 = vadd.f32 %v928_v24, %v1162_v35  ;;  %v653_v29 = vadd.f32 %v960_v25, %v1162_v35 }
 0x10c   :  { %v516_v30 = vpop.f32.mrf.mxu0  ;;  %v644_v31 = vpop.f32.mrf.mxu1 }
 0x10d   :  { %748 = vst [vmem:[%s1423_s3 + $0xe0] sm:$0xff] %v684_v26  ;;  %780 = vst [vmem:[%s1423_s3 + $0x1e0] sm:$0xff] %v716_v27  ;;  %v687_v32 = vmax.f32 %v525_v28, 0.0  ;;  %v719_v33 = vmax.f32 %v653_v29, 0.0  ;;  %v517_v34 = vadd.f32 %v1162_v35, %v516_v30  ;;  %v645_v36 = vadd.f32 %v1162_v35, %v644_v31 }
 0x10f   :  { %751 = vst [vmem:[%s1423_s3 + $0xf8] sm:$0xff] %v687_v32  ;;  %783 = vst [vmem:[%s1423_s3 + $0x1f8] sm:$0xff] %v719_v33  ;;  %v685_v37 = vmax.f32 %v517_v34, 0.0  ;;  %v717_v38 = vmax.f32 %v645_v36, 0.0 }
 0x111   :  { %749 = vst [vmem:[%s1423_s3 + $0xe8] sm:$0xff] %v685_v37  ;;  %781 = vst [vmem:[%s1423_s3 + $0x1e8] sm:$0xff] %v717_v38 }

</bundles_post_ra>
